<compile_context>
chip_gen: v5e
topology: v5e:2x2
jax: 0.10.0
libtpu: 0.0.40
codegen_flags: <defaults>
</compile_context>

<pallas_src>
import functools

import jax
import jax.numpy as jnp
from jax.experimental import pallas as pl
from jax.experimental.pallas import tpu as pltpu

LANE = 128
SUBLANE = 8


def _round_up(n, m):
    return ((n + m - 1) // m) * m


def mlp_kernel(x_ref,
               w1_ref, b1_ref, w2_ref, b2_ref, w3_ref, b3_ref,
               w4_ref, b4_ref, w5_ref, b5_ref, w6_ref, b6_ref,
               o_ref, *, apply_softmax):
    """Whole forward pass for one batch tile, all layers fused in VMEM."""

    def lin(h, w_ref, b_ref):
        # bf16 x bf16 MXU matmul with f32 accumulation + f32 bias broadcast.
        return jnp.dot(h.astype(w_ref.dtype), w_ref[...],
                       preferred_element_type=jnp.float32) + b_ref[...]

    h = x_ref[...]
    h = jnp.maximum(lin(h, w1_ref, b1_ref), 0.0)   # fc1 + relu
    h = jnp.maximum(lin(h, w2_ref, b2_ref), 0.0)   # fc2 + relu
    h = jnp.maximum(lin(h, w3_ref, b3_ref), 0.0)   # fc3 + relu
    h = jnp.maximum(lin(h, w4_ref, b4_ref), 0.0)   # fc4 + relu
    h = jnp.maximum(lin(h, w5_ref, b5_ref), 0.0)   # fc5 + relu
    logits = lin(h, w6_ref, b6_ref)                # fc6 (no relu), width == n_out

    if apply_softmax:
        # Logits already have exactly n_out columns -> no padding mask needed.
        m = jnp.max(logits, axis=-1, keepdims=True)
        e = jnp.exp(logits - m)
        s = jnp.sum(e, axis=-1, keepdims=True)
        o_ref[...] = (e * pl.reciprocal(s, approx=True)).astype(o_ref.dtype)
    else:
        o_ref[...] = logits.astype(o_ref.dtype)


def _pad_params(params, weight_dtype=jnp.bfloat16):
    """Cast weights to `weight_dtype` (biases stay f32) and zero-pad hidden
    dims to multiples of 128.  The first weight's K dim (input features) and
    the last weight's N dim (n_out) keep their natural, unpadded widths so the
    kernel's input/output blocks stay un-lane-padded."""
    n_layers = len(params)
    padded = []
    for idx, (w, b) in enumerate(params):
        k, n = w.shape
        kp = k if idx == 0 else _round_up(k, LANE)
        np_ = n if idx == n_layers - 1 else _round_up(n, LANE)
        wp = jnp.zeros((kp, np_), weight_dtype).at[:k, :n].set(w.astype(weight_dtype))
        bp = jnp.zeros((1, np_), jnp.float32).at[:, :n].set(
            b.reshape(1, -1).astype(jnp.float32))
        padded.append((wp, bp))
    return padded


def neural_net_forward(x, params, *, batch_tile=512, apply_softmax=False,
                       weight_dtype=jnp.bfloat16):
    """x: (B, n_in) f32.  params: list of 6 (W, b) with W (in, out), b (1, out).

    Returns logits (B, n_out) in f32, or softmax probabilities if apply_softmax."""
    B, n_in = x.shape
    n_out = params[-1][0].shape[-1]

    # Right-size the grid: single step with a batch-sized (sublane-aligned)
    # tile for small B; large tiles + a "parallel" grid for throughput runs.
    if B <= batch_tile:
        tile = max(SUBLANE, _round_up(B, SUBLANE))
        grid_steps = 1
    else:
        tile = batch_tile
        grid_steps = pl.cdiv(B, tile)
    B_p = grid_steps * tile

    padded_params = _pad_params(params, weight_dtype=weight_dtype)

    x = x.astype(jnp.float32)
    if B_p != B:
        x_p = jnp.zeros((B_p, n_in), jnp.float32).at[:B].set(x)
    else:
        x_p = x

    in_specs = [pl.BlockSpec((tile, n_in), lambda i: (i, 0))]
    flat_params = []
    for w, b in padded_params:
        # Weights / biases are small: whole tensors resident per grid step
        # (constant index_map -> they never re-DMA across steps).
        in_specs.append(pl.BlockSpec(w.shape, lambda i: (0, 0)))
        in_specs.append(pl.BlockSpec(b.shape, lambda i: (0, 0)))
        flat_params.extend([w, b])

    kernel = functools.partial(mlp_kernel, apply_softmax=apply_softmax)

    out_p = pl.pallas_call(
        kernel,
        out_shape=jax.ShapeDtypeStruct((B_p, n_out), jnp.float32),
        grid=(grid_steps,),
        in_specs=in_specs,
        out_specs=pl.BlockSpec((tile, n_out), lambda i: (i, 0)),
        compiler_params=pltpu.CompilerParams(dimension_semantics=("parallel",)),
    )(x_p, *flat_params)

    # Only the batch axis can be padded; feature axis is already exact.
    return out_p[:B] if B_p != B else out_p


def neural_net_predict(x, params, *, fuse_softmax=True):
    """Matches NeuralNet.predict: softmax over dim=1 of the logits."""
    if fuse_softmax:
        return neural_net_forward(x, params, apply_softmax=True)
    return jax.nn.softmax(neural_net_forward(x, params), axis=1)


def init_params(key, n_input_channels, n_output):
    """Deterministic init mimicking PyTorch nn.Linear default (U[-1/sqrt(fan_in), ..]).
    W is stored (in, out), i.e. transposed vs. PyTorch."""
    dims = [n_input_channels,
            n_input_channels * 5,
            n_input_channels * 2,
            200, 100, 20, n_output]
    params = []
    for i in range(6):
        key, kw, kb = jax.random.split(key, 3)
        fan_in, fan_out = dims[i], dims[i + 1]
        bound = 1.0 / float(fan_in) ** 0.5
        w = jax.random.uniform(kw, (fan_in, fan_out), jnp.float32, -bound, bound)
        b = jax.random.uniform(kb, (1, fan_out), jnp.float32, -bound, bound)
        params.append((w, b))
    return params, key


if __name__ == "__main__":
    # Small shapes consistent with the module: n_input_channels=32, n_output=2.
    n_in, n_out, batch = 32, 2, 16
    key = jax.random.PRNGKey(0)
    params, key = init_params(key, n_in, n_out)

    key, kx = jax.random.split(key)
    x = jax.random.uniform(kx, (batch, n_in), jnp.float32)

    out = jax.block_until_ready(neural_net_forward(x, params))

    # Pure-JAX reference mirroring the kernel's numerics (bf16 weights /
    # activations, f32 accumulation) for a tight correctness check.
    ref = x.astype(jnp.float32)
    for idx, (w, b) in enumerate(params):
        ref = jnp.dot(ref.astype(jnp.bfloat16), w.astype(jnp.bfloat16),
                      preferred_element_type=jnp.float32) + b.astype(jnp.float32)
        if idx < 5:
            ref = jnp.maximum(ref, 0.0)

    assert out.shape == (batch, n_out)
    assert jnp.allclose(out, ref, atol=1e-2, rtol=1e-2), "logits mismatch vs reference"

    # Fused-softmax predict path (approx reciprocal -> slightly looser tol).
    probs = jax.block_until_ready(neural_net_predict(x, params))
    ref_probs = jax.nn.softmax(ref, axis=1)
    assert probs.shape == (batch, n_out)
    assert jnp.allclose(jnp.sum(probs, axis=1), 1.0, atol=5e-3)
    assert jnp.allclose(probs, ref_probs, atol=5e-3, rtol=5e-3), "softmax mismatch"

    print("KERNEL_OK")
</pallas_src>

<mosaic_0001>
module attributes {stable_mosaic.version = 11 : i64} {
  func.func @mlp_kernel(%arg0: i32, %arg1: memref<16x32xf32, #tpu.memory_space<vmem>>, %arg2: memref<32x256xbf16, #tpu.memory_space<vmem>>, %arg3: memref<1x256xf32, #tpu.memory_space<vmem>>, %arg4: memref<256x128xbf16, #tpu.memory_space<vmem>>, %arg5: memref<1x128xf32, #tpu.memory_space<vmem>>, %arg6: memref<128x256xbf16, #tpu.memory_space<vmem>>, %arg7: memref<1x256xf32, #tpu.memory_space<vmem>>, %arg8: memref<256x128xbf16, #tpu.memory_space<vmem>>, %arg9: memref<1x128xf32, #tpu.memory_space<vmem>>, %arg10: memref<128x128xbf16, #tpu.memory_space<vmem>>, %arg11: memref<1x128xf32, #tpu.memory_space<vmem>>, %arg12: memref<128x2xbf16, #tpu.memory_space<vmem>>, %arg13: memref<1x2xf32, #tpu.memory_space<vmem>>, %arg14: memref<16x2xf32, #tpu.memory_space<vmem>>) attributes {dimension_semantics = [#tpu.dimension_semantics<parallel>], iteration_bounds = array<i64: 1>, scalar_prefetch = 0 : i64, scratch_operands = 0 : i64, tpu.core_type = #tpu.core_type<tc>, window_params = [{transform_indices = @transform_0, window_bounds = array<i64: 16, 32>}, {pipeline_mode = #tpu.pipeline_mode<synchronous>, transform_indices = @transform_1, window_bounds = array<i64: 32, 256>}, {pipeline_mode = #tpu.pipeline_mode<synchronous>, transform_indices = @transform_2, window_bounds = array<i64: 1, 256>}, {pipeline_mode = #tpu.pipeline_mode<synchronous>, transform_indices = @transform_3, window_bounds = array<i64: 256, 128>}, {pipeline_mode = #tpu.pipeline_mode<synchronous>, transform_indices = @transform_4, window_bounds = array<i64: 1, 128>}, {pipeline_mode = #tpu.pipeline_mode<synchronous>, transform_indices = @transform_5, window_bounds = array<i64: 128, 256>}, {pipeline_mode = #tpu.pipeline_mode<synchronous>, transform_indices = @transform_6, window_bounds = array<i64: 1, 256>}, {pipeline_mode = #tpu.pipeline_mode<synchronous>, transform_indices = @transform_7, window_bounds = array<i64: 256, 128>}, {pipeline_mode = #tpu.pipeline_mode<synchronous>, transform_indices = @transform_8, window_bounds = array<i64: 1, 128>}, {pipeline_mode = #tpu.pipeline_mode<synchronous>, transform_indices = @transform_9, window_bounds = array<i64: 128, 128>}, {pipeline_mode = #tpu.pipeline_mode<synchronous>, transform_indices = @transform_10, window_bounds = array<i64: 1, 128>}, {pipeline_mode = #tpu.pipeline_mode<synchronous>, transform_indices = @transform_11, window_bounds = array<i64: 128, 2>}, {pipeline_mode = #tpu.pipeline_mode<synchronous>, transform_indices = @transform_12, window_bounds = array<i64: 1, 2>}, {transform_indices = @transform_13, window_bounds = array<i64: 16, 2>}]} {
    %c0 = arith.constant 0 : index
    %c0_0 = arith.constant 0 : index
    %0 = vector.load %arg1[%c0, %c0_0] : memref<16x32xf32, #tpu.memory_space<vmem>>, vector<16x32xf32>
    %1 = arith.truncf %0 : vector<16x32xf32> to vector<16x32xbf16>
    %c0_1 = arith.constant 0 : index
    %c0_2 = arith.constant 0 : index
    %2 = vector.load %arg2[%c0_1, %c0_2] : memref<32x256xbf16, #tpu.memory_space<vmem>>, vector<32x256xbf16>
    %cst = arith.constant dense<0.000000e+00> : vector<16x256xf32>
    %3 = tpu.matmul %1, %2, %cst {dimension_numbers = #tpu.dot_dimension_numbers<[1], [0], [0], [1], [0, 0, 1, 1], [], []>} : vector<16x32xbf16>, vector<32x256xbf16>, vector<16x256xf32> -> vector<16x256xf32>
    %c0_3 = arith.constant 0 : index
    %c0_4 = arith.constant 0 : index
    %4 = vector.load %arg3[%c0_3, %c0_4] : memref<1x256xf32, #tpu.memory_space<vmem>>, vector<1x256xf32>
    %5 = vector.broadcast %4 : vector<1x256xf32> to vector<16x256xf32>
    %6 = arith.addf %3, %5 : vector<16x256xf32>
    %cst_5 = arith.constant 0.000000e+00 : f32
    %7 = vector.broadcast %cst_5 : f32 to vector<16x256xf32>
    %8 = arith.maximumf %6, %7 : vector<16x256xf32>
    %9 = arith.truncf %8 : vector<16x256xf32> to vector<16x256xbf16>
    %c0_6 = arith.constant 0 : index
    %c0_7 = arith.constant 0 : index
    %10 = vector.load %arg4[%c0_6, %c0_7] : memref<256x128xbf16, #tpu.memory_space<vmem>>, vector<256x128xbf16>
    %cst_8 = arith.constant dense<0.000000e+00> : vector<16x128xf32>
    %11 = tpu.matmul %9, %10, %cst_8 {dimension_numbers = #tpu.dot_dimension_numbers<[1], [0], [0], [1], [0, 0, 1, 1], [], []>} : vector<16x256xbf16>, vector<256x128xbf16>, vector<16x128xf32> -> vector<16x128xf32>
    %c0_9 = arith.constant 0 : index
    %c0_10 = arith.constant 0 : index
    %12 = vector.load %arg5[%c0_9, %c0_10] : memref<1x128xf32, #tpu.memory_space<vmem>>, vector<1x128xf32>
    %13 = vector.broadcast %12 : vector<1x128xf32> to vector<16x128xf32>
    %14 = arith.addf %11, %13 : vector<16x128xf32>
    %cst_11 = arith.constant 0.000000e+00 : f32
    %15 = vector.broadcast %cst_11 : f32 to vector<16x128xf32>
    %16 = arith.maximumf %14, %15 : vector<16x128xf32>
    %17 = arith.truncf %16 : vector<16x128xf32> to vector<16x128xbf16>
    %c0_12 = arith.constant 0 : index
    %c0_13 = arith.constant 0 : index
    %18 = vector.load %arg6[%c0_12, %c0_13] : memref<128x256xbf16, #tpu.memory_space<vmem>>, vector<128x256xbf16>
    %cst_14 = arith.constant dense<0.000000e+00> : vector<16x256xf32>
    %19 = tpu.matmul %17, %18, %cst_14 {dimension_numbers = #tpu.dot_dimension_numbers<[1], [0], [0], [1], [0, 0, 1, 1], [], []>} : vector<16x128xbf16>, vector<128x256xbf16>, vector<16x256xf32> -> vector<16x256xf32>
    %c0_15 = arith.constant 0 : index
    %c0_16 = arith.constant 0 : index
    %20 = vector.load %arg7[%c0_15, %c0_16] : memref<1x256xf32, #tpu.memory_space<vmem>>, vector<1x256xf32>
    %21 = vector.broadcast %20 : vector<1x256xf32> to vector<16x256xf32>
    %22 = arith.addf %19, %21 : vector<16x256xf32>
    %cst_17 = arith.constant 0.000000e+00 : f32
    %23 = vector.broadcast %cst_17 : f32 to vector<16x256xf32>
    %24 = arith.maximumf %22, %23 : vector<16x256xf32>
    %25 = arith.truncf %24 : vector<16x256xf32> to vector<16x256xbf16>
    %c0_18 = arith.constant 0 : index
    %c0_19 = arith.constant 0 : index
    %26 = vector.load %arg8[%c0_18, %c0_19] : memref<256x128xbf16, #tpu.memory_space<vmem>>, vector<256x128xbf16>
    %cst_20 = arith.constant dense<0.000000e+00> : vector<16x128xf32>
    %27 = tpu.matmul %25, %26, %cst_20 {dimension_numbers = #tpu.dot_dimension_numbers<[1], [0], [0], [1], [0, 0, 1, 1], [], []>} : vector<16x256xbf16>, vector<256x128xbf16>, vector<16x128xf32> -> vector<16x128xf32>
    %c0_21 = arith.constant 0 : index
    %c0_22 = arith.constant 0 : index
    %28 = vector.load %arg9[%c0_21, %c0_22] : memref<1x128xf32, #tpu.memory_space<vmem>>, vector<1x128xf32>
    %29 = vector.broadcast %28 : vector<1x128xf32> to vector<16x128xf32>
    %30 = arith.addf %27, %29 : vector<16x128xf32>
    %cst_23 = arith.constant 0.000000e+00 : f32
    %31 = vector.broadcast %cst_23 : f32 to vector<16x128xf32>
    %32 = arith.maximumf %30, %31 : vector<16x128xf32>
    %33 = arith.truncf %32 : vector<16x128xf32> to vector<16x128xbf16>
    %c0_24 = arith.constant 0 : index
    %c0_25 = arith.constant 0 : index
    %34 = vector.load %arg10[%c0_24, %c0_25] : memref<128x128xbf16, #tpu.memory_space<vmem>>, vector<128x128xbf16>
    %cst_26 = arith.constant dense<0.000000e+00> : vector<16x128xf32>
    %35 = tpu.matmul %33, %34, %cst_26 {dimension_numbers = #tpu.dot_dimension_numbers<[1], [0], [0], [1], [0, 0, 1, 1], [], []>} : vector<16x128xbf16>, vector<128x128xbf16>, vector<16x128xf32> -> vector<16x128xf32>
    %c0_27 = arith.constant 0 : index
    %c0_28 = arith.constant 0 : index
    %36 = vector.load %arg11[%c0_27, %c0_28] : memref<1x128xf32, #tpu.memory_space<vmem>>, vector<1x128xf32>
    %37 = vector.broadcast %36 : vector<1x128xf32> to vector<16x128xf32>
    %38 = arith.addf %35, %37 : vector<16x128xf32>
    %cst_29 = arith.constant 0.000000e+00 : f32
    %39 = vector.broadcast %cst_29 : f32 to vector<16x128xf32>
    %40 = arith.maximumf %38, %39 : vector<16x128xf32>
    %41 = arith.truncf %40 : vector<16x128xf32> to vector<16x128xbf16>
    %c0_30 = arith.constant 0 : index
    %c0_31 = arith.constant 0 : index
    %42 = vector.load %arg12[%c0_30, %c0_31] : memref<128x2xbf16, #tpu.memory_space<vmem>>, vector<128x2xbf16>
    %cst_32 = arith.constant dense<0.000000e+00> : vector<16x2xf32>
    %43 = tpu.matmul %41, %42, %cst_32 {dimension_numbers = #tpu.dot_dimension_numbers<[1], [0], [0], [1], [0, 0, 1, 1], [], []>} : vector<16x128xbf16>, vector<128x2xbf16>, vector<16x2xf32> -> vector<16x2xf32>
    %c0_33 = arith.constant 0 : index
    %c0_34 = arith.constant 0 : index
    %44 = vector.load %arg13[%c0_33, %c0_34] : memref<1x2xf32, #tpu.memory_space<vmem>>, vector<1x2xf32>
    %45 = vector.broadcast %44 : vector<1x2xf32> to vector<16x2xf32>
    %46 = arith.addf %43, %45 : vector<16x2xf32>
    %c0_35 = arith.constant 0 : index
    %c0_36 = arith.constant 0 : index
    %47 = vector.load %arg14[%c0_35, %c0_36] : memref<16x2xf32, #tpu.memory_space<vmem>>, vector<16x2xf32>
    tpu.vector_store %arg14[%c0_35, %c0_36], %46 {strides = array<i32>} : memref<16x2xf32, #tpu.memory_space<vmem>>, vector<16x2xf32>,
    return
  }
  func.func @transform_0(%arg0: i32) -> (i32, i32) {
    %c0_i32 = arith.constant 0 : i32
    %c0_i32_0 = arith.constant 0 : i32
    return %arg0, %c0_i32 : i32, i32
  }
  func.func @transform_1(%arg0: i32) -> (i32, i32) {
    %c0_i32 = arith.constant 0 : i32
    %c0_i32_0 = arith.constant 0 : i32
    %c0_i32_1 = arith.constant 0 : i32
    return %c0_i32, %c0_i32_0 : i32, i32
  }
  func.func @transform_2(%arg0: i32) -> (i32, i32) {
    %c0_i32 = arith.constant 0 : i32
    %c0_i32_0 = arith.constant 0 : i32
    %c0_i32_1 = arith.constant 0 : i32
    return %c0_i32, %c0_i32_0 : i32, i32
  }
  func.func @transform_3(%arg0: i32) -> (i32, i32) {
    %c0_i32 = arith.constant 0 : i32
    %c0_i32_0 = arith.constant 0 : i32
    %c0_i32_1 = arith.constant 0 : i32
    return %c0_i32, %c0_i32_0 : i32, i32
  }
  func.func @transform_4(%arg0: i32) -> (i32, i32) {
    %c0_i32 = arith.constant 0 : i32
    %c0_i32_0 = arith.constant 0 : i32
    %c0_i32_1 = arith.constant 0 : i32
    return %c0_i32, %c0_i32_0 : i32, i32
  }
  func.func @transform_5(%arg0: i32) -> (i32, i32) {
    %c0_i32 = arith.constant 0 : i32
    %c0_i32_0 = arith.constant 0 : i32
    %c0_i32_1 = arith.constant 0 : i32
    return %c0_i32, %c0_i32_0 : i32, i32
  }
  func.func @transform_6(%arg0: i32) -> (i32, i32) {
    %c0_i32 = arith.constant 0 : i32
    %c0_i32_0 = arith.constant 0 : i32
    %c0_i32_1 = arith.constant 0 : i32
    return %c0_i32, %c0_i32_0 : i32, i32
  }
  func.func @transform_7(%arg0: i32) -> (i32, i32) {
    %c0_i32 = arith.constant 0 : i32
    %c0_i32_0 = arith.constant 0 : i32
    %c0_i32_1 = arith.constant 0 : i32
    return %c0_i32, %c0_i32_0 : i32, i32
  }
  func.func @transform_8(%arg0: i32) -> (i32, i32) {
    %c0_i32 = arith.constant 0 : i32
    %c0_i32_0 = arith.constant 0 : i32
    %c0_i32_1 = arith.constant 0 : i32
    return %c0_i32, %c0_i32_0 : i32, i32
  }
  func.func @transform_9(%arg0: i32) -> (i32, i32) {
    %c0_i32 = arith.constant 0 : i32
    %c0_i32_0 = arith.constant 0 : i32
    %c0_i32_1 = arith.constant 0 : i32
    return %c0_i32, %c0_i32_0 : i32, i32
  }
  func.func @transform_10(%arg0: i32) -> (i32, i32) {
    %c0_i32 = arith.constant 0 : i32
    %c0_i32_0 = arith.constant 0 : i32
    %c0_i32_1 = arith.constant 0 : i32
    return %c0_i32, %c0_i32_0 : i32, i32
  }
  func.func @transform_11(%arg0: i32) -> (i32, i32) {
    %c0_i32 = arith.constant 0 : i32
    %c0_i32_0 = arith.constant 0 : i32
    %c0_i32_1 = arith.constant 0 : i32
    return %c0_i32, %c0_i32_0 : i32, i32
  }
  func.func @transform_12(%arg0: i32) -> (i32, i32) {
    %c0_i32 = arith.constant 0 : i32
    %c0_i32_0 = arith.constant 0 : i32
    %c0_i32_1 = arith.constant 0 : i32
    return %c0_i32, %c0_i32_0 : i32, i32
  }
  func.func @transform_13(%arg0: i32) -> (i32, i32) {
    %c0_i32 = arith.constant 0 : i32
    %c0_i32_0 = arith.constant 0 : i32
    return %arg0, %c0_i32 : i32, i32
  }
}

</mosaic_0001>

<bundles_post_ra>
// kernel: tpu_custom_call.1
= control target key start
LH: loop header
LB: loop body
LE: loop exit
PB: predicated region body
PF: predicated region fallthrough
CT: control target
= control target key end

     0   :  { %18 = vsyncpa [#allocation3], 0  ;;  %s1532_s0 = inlined_call_operand.hbm [shape: f32[16,32], index: 0, kind: input, shape index: {}]   ;;  %s1533_s1 = inlined_call_operand.hbm [shape: bf16[32,256], index: 1, kind: input, shape index: {}]   ;;  %s1534_s2 = inlined_call_operand.hbm [shape: f32[1,256], index: 2, kind: input, shape index: {}]   ;;  %s1535_s3 = inlined_call_operand.hbm [shape: bf16[256,128], index: 3, kind: input, shape index: {}]   ;;  %s1536_s4 = inlined_call_operand.vmem [shape: f32[1,128], index: 4, kind: input, shape index: {}]   ;;  %s1537_s5 = inlined_call_operand.hbm [shape: bf16[128,256], index: 5, kind: input, shape index: {}]   ;;  %s1538_s6 = inlined_call_operand.vmem [shape: f32[1,256], index: 6, kind: input, shape index: {}]   ;;  %s1539_s7 = inlined_call_operand.hbm [shape: bf16[256,128], index: 7, kind: input, shape index: {}]   ;;  %s1540_s8 = inlined_call_operand.vmem [shape: f32[1,128], index: 8, kind: input, shape index: {}]   ;;  %s1541_s9 = inlined_call_operand.vmem [shape: bf16[128,128], index: 9, kind: input, shape index: {}]   ;;  %s1542_s10 = inlined_call_operand.vmem [shape: f32[1,128], index: 10, kind: input, shape index: {}]   ;;  %s1543_s11 = inlined_call_operand.vmem [shape: bf16[128,2], index: 11, kind: input, shape index: {}]   ;;  %s1544_s12 = inlined_call_operand.vmem [shape: f32[1,2], index: 12, kind: input, shape index: {}]   ;;  %s1545_s13 = inlined_call_operand.vmem [shape: f32[16,2], index: 13, kind: output, shape index: {}]  }
   0x1   :  { %19 = vsyncpa [#allocation5], 0 }
   0x2   :  { %20 = vsyncpa [#allocation8], 0 }
   0x3   :  { %21 = vsyncpa [#allocation11], 0  ;;  %s39_s27 = sshll.u32 %s1533_s1, 4  ;;  %s1356_s28 = smov [#allocation4]   ;;  %s40_s27 = int_to_ptr.hbm [resolvable:$true] %s39_s27 }
   0x4   :  { %s41_s29 = sshll.u32 %s1356_s28, 4  ;;  %s63_s15 = sshll.u32 %s1535_s3, 4  ;;  %s42_s29 = int_to_ptr.vmem [resolvable:$true] %s41_s29  ;;  %s64_s15 = int_to_ptr.hbm [resolvable:$true] %s63_s15 }
   0x5   :  { %s1357_s16 = smov 128   ;;  %s1358_s17 = smov 8  }
   0x6   :  { %47 = dma.hbm_to_vmem [thread:$0]  %s40_s27, 512, %s42_s29, [#allocation5], %s1357_s16, %s1357_s16, %s1358_s17  }
   0x7   :  { %s1359_s18 = smov [#allocation7]   ;;  %s1360_s20 = smov 64  }
   0x8   :  { %s65_s19 = sshll.u32 %s1359_s18, 4  ;;  %s1361_s1 = smov 4   ;;  %s66_s19 = int_to_ptr.vmem [resolvable:$true] %s65_s19 }
   0x9   :  { %71 = dma.hbm_to_vmem [thread:$0]  %s64_s15, 2048, %s66_s19, [#allocation8], %s1360_s20, %s1360_s20, %s1361_s1  }
   0xa   :  { %s26_s23 = sshll.u32 %s1532_s0, 4  ;;  %s1362_s24 = smov [#allocation2]   ;;  %s27_s23 = int_to_ptr.hbm [resolvable:$true] %s26_s23 }
   0xb   :  { %s28_s3 = sshll.u32 %s1362_s24, 4  ;;  %s53_s28 = sshll.u32 %s1534_s2, 4  ;;  %s29_s3 = int_to_ptr.vmem [resolvable:$true] %s28_s3  ;;  %s54_s28 = int_to_ptr.hbm [resolvable:$true] %s53_s28 }
   0xc   :  { %34 = dma.hbm_to_vmem [thread:$0]  %s27_s23, 256, %s29_s3, [#allocation3], %s1357_s16, %s1357_s16, %s1358_s17  }
   0xd   :  { %s1363_s27 = smov [#allocation6]   ;;  %s78_s15 = sshll.u32 %s1537_s5, 4  ;;  %s79_s15 = int_to_ptr.hbm [resolvable:$true] %s78_s15 }
   0xe   :  { %s55_s29 = sshll.u32 %s1363_s27, 4  ;;  %s93_s19 = sshll.u32 %s1539_s7, 4  ;;  %s56_s29 = int_to_ptr.vmem [resolvable:$true] %s55_s29  ;;  %s94_s19 = int_to_ptr.hbm [resolvable:$true] %s93_s19 }
   0xf   :  { %58 = dma.hbm_to_vmem [thread:$0]  %s54_s28, 32, %s56_s29, [#allocation5]  }
  0x10   :  { %s1364_s21 = smov [#allocation9]   ;;  %s1365_s22 = smov [#allocation10]  }
  0x11   :  { %s80_s2 = sshll.u32 %s1364_s21, 4  ;;  %s95_s23 = sshll.u32 %s1365_s22, 4  ;;  %s81_s2 = int_to_ptr.vmem [resolvable:$true] %s80_s2  ;;  %s96_s23 = int_to_ptr.vmem [resolvable:$true] %s95_s23 }
  0x12   :  { %86 = dma.hbm_to_vmem [thread:$0]  %s79_s15, 2048, %s81_s2, [#allocation8], %s1357_s16, %s1357_s16, %s1358_s17  }
  0x13   :  { %101 = dma.hbm_to_vmem [thread:$0]  %s94_s19, 2048, %s96_s23, [#allocation11], %s1360_s20, %s1360_s20, %s1361_s1  }
  0x14   :  { %1348 = dma.done.wait [#allocation3], 256  }
  0x15   :  { %1349 = vsyncadd [#allocation3], 4294967040 }
  0x16   :  { %1350 = dma.done.wait [#allocation5], 544  }
  0x17   :  { %1351 = vsyncadd [#allocation5], 4294966752 }
  0x18   :  { %1352 = dma.done.wait [#allocation8], 4096  }
  0x19   :  { %1353 = vsyncadd [#allocation8], 4294963200 }
  0x1a   :  { %1354 = dma.done.wait [#allocation11], 2048  }
  0x1b   :  { %1355 = vsyncadd [#allocation11], 4294965248  ;;  %v858_v0 = vld [vmem:[#allocation4 + $0x10] sm:$0xf]  ;;  %v1125_v1 = vld [vmem:[#allocation4 + $0x14] sm:$0xf0] }
  0x1c   :  { %v1124_v2 = vld [vmem:[#allocation4 + $0x14] sm:$0xf]  ;;  %v859_v3 = vor.u32 %v1125_v1, %v858_v0  ;;  %v860_v4 = vld [vmem:[#allocation4 + $0x18] sm:$0xf0]  ;;  %v850_v5 = vld [vmem:[#allocation4] sm:$0xf] }
  0x1d   :  { %v1123_v6 = vld [vmem:[#allocation4 + $0x4] sm:$0xf0]  ;;  %v863_v7 = vor.u32 %v1124_v2, %v860_v4  ;;  %v1122_v8 = vld [vmem:[#allocation4 + $0x4] sm:$0xf]  ;;  %v852_v9 = vld [vmem:[#allocation4 + $0x8] sm:$0xf0] }
  0x1e   :  { %v137_v10 = vld [vmem:[#allocation2] sm:$0xff]  ;;  %180 = vmatpush.bf16.msra.mxu0 %v859_v3  ;;  %v851_v11 = vor.u32 %v1123_v6, %v850_v5  ;;  %v138_v12 = vld [vmem:[#allocation2 + $0x8] sm:$0xff]  ;;  %v855_v15 = vor.u32 %v1122_v8, %v852_v9  ;;  %vm170_vm0 = vcmask 261120   ;;  %v1130_v21 = vld [vmem:[#allocation7 + $0x20] sm:$0xff]  ;;  %vm837_vm1 = vcmask 15360  }
  0x1f   :  { %v1133_v13 = vld [vmem:[#allocation7 + $0x38] sm:$0xff]  ;;  %194 = vmatpush.bf16.msra.mxu1 %v863_v7  ;;  %v1132_v16 = vld [vmem:[#allocation7 + $0x30] sm:$0xff]  ;;  %v139_v18 = vpack.c.bf16 %v138_v12, %v137_v10  ;;  %v1131_v19 = vld [vmem:[#allocation7 + $0x28] sm:$0xff] }
  0x20   :  { %v1141_v14 = vld [vmem:[#allocation7 + $0x78] sm:$0xff]  ;;  %340 = vmatpush.bf16.msra.mxu2 %v1133_v13  ;;  %v1140_v17 = vld [vmem:[#allocation7 + $0x70] sm:$0xff]  ;;  %v1139_v20 = vld [vmem:[#allocation7 + $0x68] sm:$0xff] }
  0x21   :  { %354 = vmatpush.bf16.msra.mxu3 %v1141_v14  ;;  %v1138_v22 = vld [vmem:[#allocation7 + $0x60] sm:$0xff]  ;;  %v1129_v23 = vld [vmem:[#allocation7 + $0x18] sm:$0xff]  ;;  %v1128_v25 = vld [vmem:[#allocation7 + $0x10] sm:$0xff] }
  0x22   :  { %181 = vmatpush.bf16.msra.mxu0 %v851_v11  ;;  %v1137_v24 = vld [vmem:[#allocation7 + $0x58] sm:$0xff]  ;;  %v1136_v26 = vld [vmem:[#allocation7 + $0x50] sm:$0xff]  ;;  %v1127_v27 = vld [vmem:[#allocation7 + $0x8] sm:$0xff] }
  0x23   :  { %195 = vmatpush.bf16.msra.mxu1 %v855_v15  ;;  %v1135_v28 = vld [vmem:[#allocation7 + $0x48] sm:$0xff]  ;;  %v1126_v29 = vld [vmem:[#allocation7] sm:$0xff]  ;;  %v988_v31 = vld [vmem:[#allocation9 + $0x70] sm:$0xf] }
  0x24   :  { %341 = vmatpush.bf16.msra.mxu2 %v1132_v16  ;;  %v1134_v30 = vld [vmem:[#allocation7 + $0x40] sm:$0xff]  ;;  %v1157_v32 = vld [vmem:[#allocation9 + $0x74] sm:$0xf0]  ;;  %v1156_v33 = vld [vmem:[#allocation9 + $0x74] sm:$0xf] }
  0x25   :  { %355 = vmatpush.bf16.msra.mxu3 %v1140_v17  ;;  %864 = vmatmul.msk.bf16.vlgmr.msra.gmra.mxu0 %vm170_vm0, %v139_v18  ;;  %v989_v34 = vor.u32 %v1157_v32, %v988_v31  ;;  %v990_v35 = vld [vmem:[#allocation9 + $0x78] sm:$0xf0]  ;;  %v980_v36 = vld [vmem:[#allocation9 + $0x60] sm:$0xf]  ;;  %v1155_v37 = vld [vmem:[#allocation9 + $0x64] sm:$0xf0] }
  0x26   :  { %865 = vmatmul.msk.bf16.vlgmr.msra.gmra.mxu1 %vm170_vm0, %v139_v18  ;;  %v993_v38 = vor.u32 %v1156_v33, %v990_v35  ;;  %v1154_v39 = vld [vmem:[#allocation9 + $0x64] sm:$0xf]  ;;  %v982_v40 = vld [vmem:[#allocation9 + $0x68] sm:$0xf0]  ;;  %v981_v41 = vor.u32 %v1155_v37, %v980_v36  ;;  %v972_v43 = vld [vmem:[#allocation9 + $0x50] sm:$0xf] }
  0x27   :  { %473 = vmatpush.bf16.msrb.mxu0 %v989_v34  ;;  %v985_v42 = vor.u32 %v1154_v39, %v982_v40  ;;  %v1153_v44 = vld [vmem:[#allocation9 + $0x54] sm:$0xf0]  ;;  %v1152_v45 = vld [vmem:[#allocation9 + $0x54] sm:$0xf]  ;;  %v974_v46 = vld [vmem:[#allocation9 + $0x58] sm:$0xf0] }
  0x28   :  { %342 = vmatpush.bf16.msra.mxu2 %v1131_v19  ;;  %487 = vmatpush.bf16.msrb.mxu1 %v993_v38  ;;  %v973_v47 = vor.u32 %v1153_v44, %v972_v43  ;;  %v977_v48 = vor.u32 %v1152_v45, %v974_v46  ;;  %v964_v49 = vld [vmem:[#allocation9 + $0x40] sm:$0xf]  ;;  %v1151_v50 = vld [vmem:[#allocation9 + $0x44] sm:$0xf0]  ;;  %v1150_v51 = vld [vmem:[#allocation9 + $0x44] sm:$0xf] }
  0x29   :  { %356 = vmatpush.bf16.msra.mxu3 %v1139_v20  ;;  %v966_v52 = vld [vmem:[#allocation9 + $0x48] sm:$0xf0]  ;;  %v965_v53 = vor.u32 %v1151_v50, %v964_v49  ;;  %v144_v55 = vld [vmem:[#allocation6] sm:$0x3]  ;;  %v956_v8 = vld [vmem:[#allocation9 + $0x30] sm:$0xf] }
  0x2a   :  { %v969_v54 = vor.u32 %v1150_v51, %v966_v52  ;;  %v146_v58 = vperm.slane %v144_v55, 0  ;;  %v147_v59 = vperm.slane %v144_v55, 1  ;;  %v1149_v9 = vld [vmem:[#allocation9 + $0x34] sm:$0xf0]  ;;  %v1148_v10 = vld [vmem:[#allocation9 + $0x34] sm:$0xf] }
  0x2b   :  { %474 = vmatpush.bf16.msrb.mxu0 %v981_v41  ;;  %v957_v11 = vor.u32 %v1149_v9, %v956_v8  ;;  %v958_v12 = vld [vmem:[#allocation9 + $0x38] sm:$0xf0]  ;;  %v948_v14 = vld [vmem:[#allocation9 + $0x20] sm:$0xf]  ;;  %v1147_v15 = vld [vmem:[#allocation9 + $0x24] sm:$0xf0] }
  0x2c   :  { %343 = vmatpush.bf16.msra.mxu2 %v1130_v21  ;;  %488 = vmatpush.bf16.msrb.mxu1 %v985_v42  ;;  %v961_v13 = vor.u32 %v1148_v10, %v958_v12  ;;  %v1146_v16 = vld [vmem:[#allocation9 + $0x24] sm:$0xf]  ;;  %v949_v17 = vor.u32 %v1147_v15, %v948_v14  ;;  %v950_v18 = vld [vmem:[#allocation9 + $0x28] sm:$0xf0]  ;;  %v940_v20 = vld [vmem:[#allocation9 + $0x10] sm:$0xf] }
  0x2d   :  { %357 = vmatpush.bf16.msra.mxu3 %v1138_v22  ;;  %v953_v19 = vor.u32 %v1146_v16, %v950_v18  ;;  %v1145_v21 = vld [vmem:[#allocation9 + $0x14] sm:$0xf0]  ;;  %v1144_v22 = vld [vmem:[#allocation9 + $0x14] sm:$0xf]  ;;  %v1163_v36 = vld [vmem:[#allocation10 + $0x28] sm:$0xff] }
  0x2e   :  { %v1165_v32 = vld [vmem:[#allocation10 + $0x38] sm:$0xff]  ;;  %v1164_v34 = vld [vmem:[#allocation10 + $0x30] sm:$0xff]  ;;  %v1171_v37 = vld [vmem:[#allocation10 + $0x68] sm:$0xff] }
  0x2f   :  { %475 = vmatpush.bf16.msrb.mxu0 %v973_v47  ;;  %v1173_v33 = vld [vmem:[#allocation10 + $0x78] sm:$0xff]  ;;  %v1172_v35 = vld [vmem:[#allocation10 + $0x70] sm:$0xff]  ;;  %v1162_v38 = vld [vmem:[#allocation10 + $0x20] sm:$0xff] }
  0x30   :  { %344 = vmatpush.bf16.msra.mxu2 %v1129_v23  ;;  %489 = vmatpush.bf16.msrb.mxu1 %v977_v48  ;;  %v941_v23 = vor.u32 %v1145_v21, %v940_v20  ;;  %v1170_v39 = vld [vmem:[#allocation10 + $0x60] sm:$0xff]  ;;  %v1200_v41 = vld [vmem:[%s1536_s4] ss:$0 sm:$0xff]  ;;  %v1161_v52 = vld [vmem:[#allocation10 + $0x18] sm:$0xff] }
  0x31   :  { %358 = vmatpush.bf16.msra.mxu3 %v1137_v24  ;;  %v942_v24 = vld [vmem:[#allocation9 + $0x18] sm:$0xf0]  ;;  %v1168_v55 = vld [vmem:[#allocation10 + $0x50] sm:$0xff]  ;;  %v1189_v21 = vld [vmem:[%s1543_s11 + $0x38] sm:$0xff] }
  0x32   :  { %v1176_v18 = vld [vmem:[%s1541_s9 + $0x10] sm:$0xff]  ;;  %v1174_v20 = vld [vmem:[%s1541_s9] sm:$0xff] }
  0x33   :  { %476 = vmatpush.bf16.msrb.mxu0 %v965_v53  ;;  %v1169_v53 = vld [vmem:[#allocation10 + $0x58] sm:$0xff] }
  0x34   :  { %345 = vmatpush.bf16.msra.mxu2 %v1128_v25  ;;  %490 = vmatpush.bf16.msrb.mxu1 %v969_v54  ;;  %v945_v25 = vor.u32 %v1144_v22, %v942_v24  ;;  %v1160_v54 = vld [vmem:[#allocation10 + $0x10] sm:$0xff]  ;;  %v1188_v22 = vld [vmem:[%s1543_s11 + $0x30] sm:$0xff] }
  0x35   :  { %359 = vmatpush.bf16.msra.mxu3 %v1136_v26  ;;  %v932_v26 = vld [vmem:[#allocation9] sm:$0xf]  ;;  %v1186_v24 = vld [vmem:[%s1543_s11 + $0x20] sm:$0xff] }
  0x37   :  { %477 = vmatpush.bf16.msrb.mxu0 %v957_v11 }
  0x38   :  { %346 = vmatpush.bf16.msra.mxu2 %v1127_v27  ;;  %491 = vmatpush.bf16.msrb.mxu1 %v961_v13  ;;  %v1143_v27 = vld [vmem:[#allocation9 + $0x4] sm:$0xf0] }
  0x39   :  { %360 = vmatpush.bf16.msra.mxu3 %v1135_v28  ;;  %v1142_v28 = vld [vmem:[#allocation9 + $0x4] sm:$0xf] }
  0x3b   :  { %478 = vmatpush.bf16.msrb.mxu0 %v949_v17  ;;  %v1177_v17 = vld [vmem:[%s1541_s9 + $0x18] sm:$0xff] }
  0x3c   :  { %347 = vmatpush.bf16.msra.mxu2 %v1126_v29  ;;  %492 = vmatpush.bf16.msrb.mxu1 %v953_v19  ;;  %v933_v29 = vor.u32 %v1143_v27, %v932_v26  ;;  %v1175_v19 = vld [vmem:[%s1541_s9 + $0x8] sm:$0xff]  ;;  %v1201_v27 = vld [vmem:[%s1540_s8] ss:$0 sm:$0xff] }
  0x3d   :  { %361 = vmatpush.bf16.msra.mxu3 %v1134_v30  ;;  %v934_v30 = vld [vmem:[#allocation9 + $0x8] sm:$0xf0] }
  0x3e   :  { %v937_v31 = vor.u32 %v1142_v28, %v934_v30 }
  0x3f   :  { %479 = vmatpush.bf16.msrb.mxu0 %v941_v23  ;;  %v1187_v23 = vld [vmem:[%s1543_s11 + $0x28] sm:$0xff] }
  0x40   :  { %493 = vmatpush.bf16.msrb.mxu1 %v945_v25  ;;  %639 = vmatpush.bf16.msrb.mxu2 %v1165_v32 }
  0x41   :  { %653 = vmatpush.bf16.msrb.mxu3 %v1173_v33 }
  0x43   :  { %480 = vmatpush.bf16.msrb.mxu0 %v933_v29 }
  0x44   :  { %494 = vmatpush.bf16.msrb.mxu1 %v937_v31  ;;  %640 = vmatpush.bf16.msrb.mxu2 %v1164_v34 }
  0x45   :  { %654 = vmatpush.bf16.msrb.mxu3 %v1172_v35 }
  0x48   :  { %641 = vmatpush.bf16.msrb.mxu2 %v1163_v36  ;;  %823 = vmatpush.bf16.msra.mxu1 %v1189_v21 }
  0x49   :  { %655 = vmatpush.bf16.msrb.mxu3 %v1171_v37  ;;  %v1185_v37 = vld [vmem:[%s1543_s11 + $0x18] sm:$0xff] }
  0x4c   :  { %642 = vmatpush.bf16.msrb.mxu2 %v1162_v38  ;;  %824 = vmatpush.bf16.msra.mxu1 %v1188_v22  ;;  %v1184_v38 = vld [vmem:[%s1543_s11 + $0x10] sm:$0xff] }
  0x4d   :  { %656 = vmatpush.bf16.msrb.mxu3 %v1170_v39  ;;  %v1183_v39 = vld [vmem:[%s1543_s11 + $0x8] sm:$0xff] }
  0x50   :  { %643 = vmatpush.bf16.msrb.mxu2 %v1161_v52  ;;  %825 = vmatpush.bf16.msra.mxu1 %v1187_v23 }
  0x51   :  { %657 = vmatpush.bf16.msrb.mxu3 %v1169_v53 }
  0x54   :  { %644 = vmatpush.bf16.msrb.mxu2 %v1160_v54  ;;  %826 = vmatpush.bf16.msra.mxu1 %v1186_v24 }
  0x55   :  { %658 = vmatpush.bf16.msrb.mxu3 %v1168_v55 }
  0x58   :  { %827 = vmatpush.bf16.msra.mxu1 %v1185_v37 }
  0x5c   :  { %828 = vmatpush.bf16.msra.mxu1 %v1184_v38 }
  0x60   :  { %829 = vmatpush.bf16.msra.mxu1 %v1183_v39 }
  0xa2   :  { %v183_v56 = vpop.f32.mrf.mxu0 }
  0xa3   :  { %v197_v57 = vpop.f32.mrf.mxu1  ;;  %v184_v60 = vadd.f32 %v183_v56, %v146_v58  ;;  %v1159_v56 = vld [vmem:[#allocation10 + $0x8] sm:$0xff] }
  0xa4   :  { %v198_v61 = vadd.f32 %v197_v57, %v147_v59  ;;  %v1167_v57 = vld [vmem:[#allocation10 + $0x48] sm:$0xff]  ;;  %645 = vmatpush.bf16.msrb.mxu2 %v1159_v56 }
  0xa5   :  { %v202_v2 = vmax.f32 %v184_v60, 0.0  ;;  %659 = vmatpush.bf16.msrb.mxu3 %v1167_v57  ;;  %v1181_v60 = vld [vmem:[%s1541_s9 + $0x38] sm:$0xff] }
  0xa6   :  { %v203_v4 = vmax.f32 %v198_v61, 0.0  ;;  %738 = vmatpush.bf16.msra.mxu0 %v1181_v60  ;;  %v1180_v61 = vld [vmem:[%s1541_s9 + $0x30] sm:$0xff] }
  0xaa   :  { %v185_v62 = vpop.f32.mrf.mxu0  ;;  %739 = vmatpush.bf16.msra.mxu0 %v1180_v61 }
  0xab   :  { %v186_v63 = vadd.f32 %v185_v62, %v146_v58  ;;  %v199_v0 = vpop.f32.mrf.mxu1  ;;  %v1158_v58 = vld [vmem:[#allocation10] sm:$0xff]  ;;  %v1179_v62 = vld [vmem:[%s1541_s9 + $0x28] sm:$0xff] }
  0xac   :  { %v200_v1 = vadd.f32 %v199_v0, %v147_v59  ;;  %v1166_v59 = vld [vmem:[#allocation10 + $0x40] sm:$0xff]  ;;  %646 = vmatpush.bf16.msrb.mxu2 %v1158_v58  ;;  %v387_v0 = vld [vmem:[%s1538_s6] sm:$0x3] }
  0xad   :  { %v204_v3 = vmax.f32 %v186_v63, 0.0  ;;  %660 = vmatpush.bf16.msrb.mxu3 %v1166_v59  ;;  %v1178_v63 = vld [vmem:[%s1541_s9 + $0x20] sm:$0xff] }
  0xae   :  { %v205_v5 = vmax.f32 %v200_v1, 0.0  ;;  %740 = vmatpush.bf16.msra.mxu0 %v1179_v62 }
  0xaf   :  { %v206_v6 = vpack.c.bf16 %v204_v3, %v202_v2  ;;  %v389_v3 = vperm.slane %v387_v0, 0 }
  0xb0   :  { %v207_v7 = vpack.c.bf16 %v205_v5, %v203_v4  ;;  %v390_v4 = vperm.slane %v387_v0, 1 }
  0xb1   :  { %348 = vmatmul.bf16.vlgmr.msra.gmra.mxu2 %v206_v6 }
  0xb2   :  { %362 = vmatmul.bf16.vlgmr.msra.gmra.mxu3 %v207_v7  ;;  %741 = vmatpush.bf16.msra.mxu0 %v1178_v63 }
  0xb6   :  { %742 = vmatpush.bf16.msra.mxu0 %v1177_v17 }
  0xba   :  { %743 = vmatpush.bf16.msra.mxu0 %v1176_v18 }
  0xbe   :  { %744 = vmatpush.bf16.msra.mxu0 %v1175_v19 }
  0xc2   :  { %745 = vmatpush.bf16.msra.mxu0 %v1174_v20 }
 0x134   :  { %v349_v40 = vpop.f32.mrf.mxu2 }
 0x135   :  { %v363_v42 = vpop.f32.mrf.mxu3  ;;  %v350_v43 = vadd.f32 %v1200_v41, %v349_v40  ;;  %v1182_v40 = vld [vmem:[%s1543_s11] sm:$0xff] }
 0x136   :  { %830 = vmatpush.bf16.msra.mxu1 %v1182_v40 }
 0x137   :  { %v364_v45 = vadd.f32 %v363_v42, %v350_v43  ;;  %v1202_v42 = vld [vmem:[%s1542_s10] ss:$0 sm:$0xff] }
 0x139   :  { %v368_v49 = vmax.f32 %v364_v45, 0.0 }
 0x13c   :  { %v351_v44 = vpop.f32.mrf.mxu2 }
 0x13d   :  { %v352_v46 = vadd.f32 %v1200_v41, %v351_v44  ;;  %v365_v47 = vpop.f32.mrf.mxu3 }
 0x13f   :  { %v366_v48 = vadd.f32 %v365_v47, %v352_v46 }
 0x141   :  { %v369_v50 = vmax.f32 %v366_v48, 0.0 }
 0x143   :  { %v370_v51 = vpack.c.bf16 %v369_v50, %v368_v49  ;;  %v1203_v49 = vld [vmem:[%s1544_s12] ss:$0 sm:$0xff] }
 0x145   :  { %481 = vmatmul.bf16.vlgmr.msrb.gmra.mxu0 %v370_v51  ;;  %495 = vmatmul.bf16.vlgmr.msrb.gmra.mxu1 %v370_v51 }
 0x1c2   :  { %v482_v1 = vpop.f32.mrf.mxu0  ;;  %v496_v2 = vpop.f32.mrf.mxu1 }
 0x1c3   :  { %v483_v5 = vadd.f32 %v482_v1, %v389_v3  ;;  %v497_v6 = vadd.f32 %v496_v2, %v390_v4 }
 0x1c5   :  { %v501_v11 = vmax.f32 %v483_v5, 0.0  ;;  %v502_v12 = vmax.f32 %v497_v6, 0.0 }
 0x1ca   :  { %v484_v7 = vpop.f32.mrf.mxu0  ;;  %v498_v8 = vpop.f32.mrf.mxu1 }
 0x1cb   :  { %v485_v9 = vadd.f32 %v484_v7, %v389_v3  ;;  %v499_v10 = vadd.f32 %v498_v8, %v390_v4 }
 0x1cd   :  { %v503_v13 = vmax.f32 %v485_v9, 0.0  ;;  %v504_v14 = vmax.f32 %v499_v10, 0.0 }
 0x1cf   :  { %v505_v15 = vpack.c.bf16 %v503_v13, %v501_v11  ;;  %v506_v16 = vpack.c.bf16 %v504_v14, %v502_v12 }
 0x1d1   :  { %647 = vmatmul.bf16.vlgmr.msrb.gmra.mxu2 %v505_v15  ;;  %661 = vmatmul.bf16.vlgmr.msrb.gmra.mxu3 %v506_v16 }
 0x254   :  { %v648_v25 = vpop.f32.mrf.mxu2  ;;  %v662_v26 = vpop.f32.mrf.mxu3 }
 0x255   :  { %v649_v28 = vadd.f32 %v1201_v27, %v648_v25 }
 0x257   :  { %v663_v30 = vadd.f32 %v662_v26, %v649_v28 }
 0x259   :  { %v667_v34 = vmax.f32 %v663_v30, 0.0 }
 0x25c   :  { %v650_v29 = vpop.f32.mrf.mxu2  ;;  %v664_v32 = vpop.f32.mrf.mxu3 }
 0x25d   :  { %v651_v31 = vadd.f32 %v1201_v27, %v650_v29 }
 0x25f   :  { %v665_v33 = vadd.f32 %v664_v32, %v651_v31 }
 0x261   :  { %v668_v35 = vmax.f32 %v665_v33, 0.0 }
 0x263   :  { %v669_v36 = vpack.c.bf16 %v668_v35, %v667_v34 }
 0x265   :  { %746 = vmatmul.bf16.vlgmr.msra.gmra.mxu0 %v669_v36 }
 0x2e2   :  { %v747_v41 = vpop.f32.mrf.mxu0 }
 0x2e3   :  { %v748_v43 = vadd.f32 %v1202_v42, %v747_v41 }
 0x2e5   :  { %v752_v46 = vmax.f32 %v748_v43, 0.0 }
 0x2ea   :  { %v749_v44 = vpop.f32.mrf.mxu0 }
 0x2eb   :  { %v750_v45 = vadd.f32 %v1202_v42, %v749_v44 }
 0x2ed   :  { %v753_v47 = vmax.f32 %v750_v45, 0.0 }
 0x2ef   :  { %v754_v48 = vpack.c.bf16 %v753_v47, %v752_v46 }
 0x2f1   :  { %831 = vmatmul.bf16.vlgmr.msra.gmra.mxu1 %v754_v48 }
 0x36e   :  { %v832_v50 = vpop.f32.mrf.mxu1 }
 0x36f   :  { %v833_v51 = vadd.f32 %v1203_v49, %v832_v50 }
 0x371   :  { %838 = vst.msk [vmem:[%s1545_s13] sm:$0xff] %vm837_vm1, %v833_v51 }
 0x376   :  { %v834_v52 = vpop.f32.mrf.mxu1 }
 0x377   :  { %v835_v53 = vadd.f32 %v1203_v49, %v834_v52 }
 0x379   :  { %839 = vst.msk [vmem:[%s1545_s13 + $0x8] sm:$0xff] %vm837_vm1, %v835_v53 }
 0x37a   :  { %844 = vsyncpa [#allocation3], 1 }
 0x37b   :  { %845 = vsyncpa [#allocation5], 1 }
 0x37c   :  { %846 = vsyncpa [#allocation8], 1 }
 0x37d   :  { %847 = vsyncpa [#allocation11], 1 }

</bundles_post_ra>
